<compile_context>
chip_gen: v6e
topology: v6e:2x2x1
jax: 0.10.0
libtpu: 0.0.40
codegen_flags: <defaults>
</compile_context>

<pallas_src>
import functools

import jax
import jax.numpy as jnp
from jax import lax
from jax.experimental import pallas as pl
from jax.experimental.pallas import tpu as pltpu

_MiB = 1024 * 1024


# -----------------------------------------------------------------------------
# generation-aware VMEM planning
# -----------------------------------------------------------------------------
def _vmem_plan():
    """Returns (tile budget bytes, vmem_limit_bytes) derived from the chip."""
    cap = None
    try:
        cap = int(getattr(pltpu.get_tpu_info(), "vmem_capacity_bytes", 0)) or None
    except Exception:
        cap = None
    if cap is None:
        cap = 64 * _MiB  # conservative default (v7x per-TC VMEM)
    limit = max(min(cap // 2, 64 * _MiB), 16 * _MiB)
    budget = (limit * 3) // 4  # headroom for Mosaic internal scratch / accounting slack
    return budget, limit


def _pick_h_tile(H, row_bytes, budget):
    """Largest H tile (multiple of 8, or full H) whose double-buffered slabs fit."""
    th_max = max(int(budget // max(row_bytes, 1)), 1)
    if th_max >= H or H <= 8:
        return H
    return min(max((th_max // 8) * 8, 8), H)


# -----------------------------------------------------------------------------
# Pallas kernels
# -----------------------------------------------------------------------------
def _add_coords_2d_kernel(x_ref, o_ref, *, H, with_r):
    # x_ref: (C, th, W)   o_ref: (C + 2(+1), th, W)
    C, th, W = x_ref.shape
    h0 = pl.program_id(1) * th
    y_i = (lax.broadcasted_iota(jnp.int32, (th, W), 0) + h0).astype(jnp.float32)
    x_i = lax.broadcasted_iota(jnp.int32, (th, W), 1).astype(jnp.float32)
    # NOTE: H==1 / W==1 yields nan/inf, same as the PyTorch reference.
    xx = y_i / (H - 1) * 2.0 - 1.0
    yy = x_i / (W - 1) * 2.0 - 1.0
    # Sliced stores: copy input channels, then write each coord channel directly.
    o_ref[0:C, :, :] = x_ref[...]
    o_ref[C, :, :] = xx.astype(o_ref.dtype)
    o_ref[C + 1, :, :] = yy.astype(o_ref.dtype)
    if with_r:
        rr = jnp.sqrt((xx - 0.5) ** 2 + (yy - 0.5) ** 2)
        o_ref[C + 2, :, :] = rr.astype(o_ref.dtype)


def _add_coords_3d_kernel(x_ref, o_ref, *, with_r):
    # x_ref: (C, td, th, W)   o_ref: (C + 3(+1), td, th, W)
    C, td, th, W = x_ref.shape
    d0 = pl.program_id(1) * td
    h0 = pl.program_id(2) * th
    shp = (td, th, W)
    z_i = (lax.broadcasted_iota(jnp.int32, shp, 0) + d0).astype(jnp.float32)
    y_i = (lax.broadcasted_iota(jnp.int32, shp, 1) + h0).astype(jnp.float32)
    x_i = lax.broadcasted_iota(jnp.int32, shp, 2).astype(jnp.float32)
    xx = y_i + z_i   # reference: cat([xy_channel + i for i in range(dim_z)]) -> y + z
    yy = x_i + z_i   #            cat([yz_channel + i for i in range(dim_x)]) -> z + x
    zz = x_i + y_i   #            cat([zx_channel + i for i in range(dim_y)]) -> x + y
    o_ref[0:C, :, :, :] = x_ref[...]
    o_ref[C, :, :, :] = xx.astype(o_ref.dtype)
    o_ref[C + 1, :, :, :] = yy.astype(o_ref.dtype)
    o_ref[C + 2, :, :, :] = zz.astype(o_ref.dtype)
    if with_r:
        rr = jnp.sqrt((xx - 0.5) ** 2 + (yy - 0.5) ** 2 + (zz - 0.5) ** 2)
        o_ref[C + 3, :, :, :] = rr.astype(o_ref.dtype)


# -----------------------------------------------------------------------------
# wrappers
# -----------------------------------------------------------------------------
def add_coords_2d(x, with_r=False):
    N, C, H, W = x.shape
    C_out = C + 2 + int(with_r)
    budget, limit = _vmem_plan()
    itemsize = jnp.dtype(x.dtype).itemsize
    # double-buffered input + output slab bytes per row of H
    row_bytes = 2 * (C + C_out) * W * itemsize
    th = _pick_h_tile(H, row_bytes, budget)
    grid = (N, pl.cdiv(H, th))

    kernel = functools.partial(_add_coords_2d_kernel, H=H, with_r=with_r)
    return pl.pallas_call(
        kernel,
        out_shape=jax.ShapeDtypeStruct((N, C_out, H, W), x.dtype),
        grid=grid,
        in_specs=[pl.BlockSpec((pl.Squeezed(), C, th, W), lambda n, h: (n, 0, h, 0))],
        out_specs=pl.BlockSpec((pl.Squeezed(), C_out, th, W), lambda n, h: (n, 0, h, 0)),
        compiler_params=pltpu.CompilerParams(
            dimension_semantics=("parallel", "parallel"),
            vmem_limit_bytes=limit,
        ),
    )(x)


def add_coords_3d(x, with_r=False):
    N, C, D, H, W = x.shape
    C_out = C + 3 + int(with_r)
    budget, limit = _vmem_plan()
    itemsize = jnp.dtype(x.dtype).itemsize
    row_bytes = 2 * (C + C_out) * W * itemsize
    plane_bytes = row_bytes * H  # double-buffered slabs for one full (·, H, W) slice

    if plane_bytes <= budget:
        # Full H per step; grow the D tile to keep each DMA long.
        th = H
        td = min(max(int(budget // plane_bytes), 1), D)
        grid = (N, pl.cdiv(D, td), 1)
    else:
        # Large spatial planes: one D slice per step, tile H.
        td = 1
        th = _pick_h_tile(H, row_bytes, budget)
        grid = (N, D, pl.cdiv(H, th))

    kernel = functools.partial(_add_coords_3d_kernel, with_r=with_r)
    return pl.pallas_call(
        kernel,
        out_shape=jax.ShapeDtypeStruct((N, C_out, D, H, W), x.dtype),
        grid=grid,
        in_specs=[
            pl.BlockSpec((pl.Squeezed(), C, td, th, W),
                         lambda n, d, h: (n, 0, d, h, 0))
        ],
        out_specs=pl.BlockSpec((pl.Squeezed(), C_out, td, th, W),
                               lambda n, d, h: (n, 0, d, h, 0)),
        compiler_params=pltpu.CompilerParams(
            dimension_semantics=("parallel", "parallel", "parallel"),
            vmem_limit_bytes=limit,
        ),
    )(x)


class AddCoords:
    """JAX/Pallas equivalent of the PyTorch AddCoords module."""

    def __init__(self, rank, with_r=False):
        self.rank = rank
        self.with_r = with_r

    def __call__(self, input_tensor, device=None):  # `device` kept for API parity; unused
        if self.rank == 2:
            return add_coords_2d(input_tensor, self.with_r)
        if self.rank == 3:
            return add_coords_3d(input_tensor, self.with_r)
        raise NotImplementedError


# -----------------------------------------------------------------------------
# pure-jnp reference (replicates the PyTorch forward) for correctness checking
# -----------------------------------------------------------------------------
def _add_coords_ref(x, rank, with_r):
    if rank == 2:
        N, C, H, W = x.shape
        y = jnp.arange(H, dtype=jnp.float32)[:, None]
        xg = jnp.arange(W, dtype=jnp.float32)[None, :]
        xx = jnp.broadcast_to(y / (H - 1) * 2.0 - 1.0, (H, W))
        yy = jnp.broadcast_to(xg / (W - 1) * 2.0 - 1.0, (H, W))
        chans = [xx, yy]
        if with_r:
            chans.append(jnp.sqrt((xx - 0.5) ** 2 + (yy - 0.5) ** 2))
        coords = jnp.broadcast_to(jnp.stack(chans, 0)[None], (N, len(chans), H, W))
        return jnp.concatenate([x, coords.astype(x.dtype)], axis=1)
    N, C, D, H, W = x.shape
    z = jnp.arange(D, dtype=jnp.float32)[:, None, None]
    y = jnp.arange(H, dtype=jnp.float32)[None, :, None]
    xg = jnp.arange(W, dtype=jnp.float32)[None, None, :]
    xx = jnp.broadcast_to(y + z, (D, H, W))
    yy = jnp.broadcast_to(xg + z, (D, H, W))
    zz = jnp.broadcast_to(xg + y, (D, H, W))
    chans = [xx, yy, zz]
    if with_r:
        chans.append(jnp.sqrt((xx - 0.5) ** 2 + (yy - 0.5) ** 2 + (zz - 0.5) ** 2))
    coords = jnp.broadcast_to(jnp.stack(chans, 0)[None], (N, len(chans), D, H, W))
    return jnp.concatenate([x, coords.astype(x.dtype)], axis=1)


if __name__ == "__main__":
    key = jax.random.PRNGKey(0)
    k3, k2, k2b = jax.random.split(key, 3)

    # rank = 3, with_r = False  (the CoordConv3d front-end case)
    x3 = jax.random.normal(k3, (2, 4, 8, 16, 16), jnp.float32)   # (N, C, D, H, W)
    f3 = jax.jit(AddCoords(rank=3, with_r=False))
    y3 = jax.block_until_ready(f3(x3))
    r3 = _add_coords_ref(x3, 3, False)
    assert y3.shape == (2, 7, 8, 16, 16) and y3.dtype == jnp.float32
    assert bool(jnp.allclose(y3, r3, rtol=1e-6, atol=1e-6))

    # rank = 2, with_r = True  (normalized coordinates + radius channel)
    x2 = jax.random.normal(k2, (2, 4, 16, 16), jnp.float32)       # (N, C, H, W)
    f2 = jax.jit(AddCoords(rank=2, with_r=True))
    y2 = jax.block_until_ready(f2(x2))
    r2 = _add_coords_ref(x2, 2, True)
    assert y2.shape == (2, 7, 16, 16) and y2.dtype == jnp.float32
    assert bool(jnp.allclose(y2, r2, rtol=1e-6, atol=1e-6))

    # rank = 2, non-multiple-of-8 H exercising the cdiv/ragged-tile path
    x2b = jax.random.normal(k2b, (1, 4, 20, 24), jnp.float32)
    f2b = jax.jit(AddCoords(rank=2, with_r=False))
    y2b = jax.block_until_ready(f2b(x2b))
    r2b = _add_coords_ref(x2b, 2, False)
    assert y2b.shape == (1, 6, 20, 24)
    assert bool(jnp.allclose(y2b, r2b, rtol=1e-6, atol=1e-6))

    print("KERNEL_OK")
</pallas_src>

<mosaic_0001>
module attributes {stable_mosaic.version = 11 : i64} {
  func.func @_add_coords_3d_kernel(%arg0: i32, %arg1: i32, %arg2: i32, %arg3: memref<1x4x8x16x16xf32, #tpu.memory_space<vmem>>, %arg4: memref<1x7x8x16x16xf32, #tpu.memory_space<vmem>>) attributes {dimension_semantics = [#tpu.dimension_semantics<parallel>, #tpu.dimension_semantics<parallel>, #tpu.dimension_semantics<parallel>], iteration_bounds = array<i64: 2, 1, 1>, scalar_prefetch = 0 : i64, scratch_operands = 0 : i64, tpu.core_type = #tpu.core_type<tc>, window_params = [{transform_indices = @transform_0, window_bounds = array<i64: 1, 4, 8, 16, 16>}, {transform_indices = @transform_1, window_bounds = array<i64: 1, 7, 8, 16, 16>}]} {
    %c8_i32 = arith.constant 8 : i32
    %0 = arith.muli %arg1, %c8_i32 : i32
    %c16_i32 = arith.constant 16 : i32
    %1 = arith.muli %arg2, %c16_i32 : i32
    %2 = tpu.iota {dimensions = array<i32: 0>} : vector<8x16x16xi32>
    %3 = vector.broadcast %0 : i32 to vector<8x16x16xi32>
    %4 = arith.addi %2, %3 : vector<8x16x16xi32>
    %5 = arith.sitofp %4 : vector<8x16x16xi32> to vector<8x16x16xf32>
    %6 = tpu.iota {dimensions = array<i32: 1>} : vector<8x16x16xi32>
    %7 = vector.broadcast %1 : i32 to vector<8x16x16xi32>
    %8 = arith.addi %6, %7 : vector<8x16x16xi32>
    %9 = arith.sitofp %8 : vector<8x16x16xi32> to vector<8x16x16xf32>
    %10 = tpu.iota {dimensions = array<i32: 2>} : vector<8x16x16xi32>
    %11 = arith.sitofp %10 : vector<8x16x16xi32> to vector<8x16x16xf32>
    %12 = arith.addf %9, %5 : vector<8x16x16xf32>
    %13 = arith.addf %11, %5 : vector<8x16x16xf32>
    %14 = arith.addf %11, %9 : vector<8x16x16xf32>
    %c0 = arith.constant 0 : index
    %c0_0 = arith.constant 0 : index
    %c0_1 = arith.constant 0 : index
    %c0_2 = arith.constant 0 : index
    %c0_3 = arith.constant 0 : index
    %15 = vector.load %arg3[%c0, %c0_0, %c0_1, %c0_2, %c0_3] : memref<1x4x8x16x16xf32, #tpu.memory_space<vmem>>, vector<1x4x8x16x16xf32>
    %16 = vector.shape_cast %15 : vector<1x4x8x16x16xf32> to vector<4x8x16x16xf32>
    %c0_4 = arith.constant 0 : index
    %c0_5 = arith.constant 0 : index
    %c0_6 = arith.constant 0 : index
    %c0_7 = arith.constant 0 : index
    %c0_8 = arith.constant 0 : index
    %17 = vector.load %arg4[%c0_4, %c0_5, %c0_6, %c0_7, %c0_8] : memref<1x7x8x16x16xf32, #tpu.memory_space<vmem>>, vector<1x4x8x16x16xf32>
    %18 = vector.shape_cast %17 : vector<1x4x8x16x16xf32> to vector<4x8x16x16xf32>
    %19 = vector.shape_cast %16 : vector<4x8x16x16xf32> to vector<1x4x8x16x16xf32>
    tpu.vector_store %arg4[%c0_4, %c0_5, %c0_6, %c0_7, %c0_8], %19 {strides = array<i32>} : memref<1x7x8x16x16xf32, #tpu.memory_space<vmem>>, vector<1x4x8x16x16xf32>,
    %c0_9 = arith.constant 0 : index
    %c4 = arith.constant 4 : index
    %c0_10 = arith.constant 0 : index
    %c0_11 = arith.constant 0 : index
    %c0_12 = arith.constant 0 : index
    %20 = vector.load %arg4[%c0_9, %c4, %c0_10, %c0_11, %c0_12] : memref<1x7x8x16x16xf32, #tpu.memory_space<vmem>>, vector<1x1x8x16x16xf32>
    %21 = vector.shape_cast %20 : vector<1x1x8x16x16xf32> to vector<8x16x16xf32>
    %22 = vector.shape_cast %12 : vector<8x16x16xf32> to vector<1x1x8x16x16xf32>
    tpu.vector_store %arg4[%c0_9, %c4, %c0_10, %c0_11, %c0_12], %22 {strides = array<i32>} : memref<1x7x8x16x16xf32, #tpu.memory_space<vmem>>, vector<1x1x8x16x16xf32>,
    %c0_13 = arith.constant 0 : index
    %c5 = arith.constant 5 : index
    %c0_14 = arith.constant 0 : index
    %c0_15 = arith.constant 0 : index
    %c0_16 = arith.constant 0 : index
    %23 = vector.load %arg4[%c0_13, %c5, %c0_14, %c0_15, %c0_16] : memref<1x7x8x16x16xf32, #tpu.memory_space<vmem>>, vector<1x1x8x16x16xf32>
    %24 = vector.shape_cast %23 : vector<1x1x8x16x16xf32> to vector<8x16x16xf32>
    %25 = vector.shape_cast %13 : vector<8x16x16xf32> to vector<1x1x8x16x16xf32>
    tpu.vector_store %arg4[%c0_13, %c5, %c0_14, %c0_15, %c0_16], %25 {strides = array<i32>} : memref<1x7x8x16x16xf32, #tpu.memory_space<vmem>>, vector<1x1x8x16x16xf32>,
    %c0_17 = arith.constant 0 : index
    %c6 = arith.constant 6 : index
    %c0_18 = arith.constant 0 : index
    %c0_19 = arith.constant 0 : index
    %c0_20 = arith.constant 0 : index
    %26 = vector.load %arg4[%c0_17, %c6, %c0_18, %c0_19, %c0_20] : memref<1x7x8x16x16xf32, #tpu.memory_space<vmem>>, vector<1x1x8x16x16xf32>
    %27 = vector.shape_cast %26 : vector<1x1x8x16x16xf32> to vector<8x16x16xf32>
    %28 = vector.shape_cast %14 : vector<8x16x16xf32> to vector<1x1x8x16x16xf32>
    tpu.vector_store %arg4[%c0_17, %c6, %c0_18, %c0_19, %c0_20], %28 {strides = array<i32>} : memref<1x7x8x16x16xf32, #tpu.memory_space<vmem>>, vector<1x1x8x16x16xf32>,
    return
  }
  func.func @transform_0(%arg0: i32, %arg1: i32, %arg2: i32) -> (i32, i32, i32, i32, i32) {
    %c0_i32 = arith.constant 0 : i32
    %c0_i32_0 = arith.constant 0 : i32
    %c0_i32_1 = arith.constant 0 : i32
    return %arg0, %c0_i32, %arg1, %arg2, %c0_i32_0 : i32, i32, i32, i32, i32
  }
  func.func @transform_1(%arg0: i32, %arg1: i32, %arg2: i32) -> (i32, i32, i32, i32, i32) {
    %c0_i32 = arith.constant 0 : i32
    %c0_i32_0 = arith.constant 0 : i32
    %c0_i32_1 = arith.constant 0 : i32
    return %arg0, %c0_i32, %arg1, %arg2, %c0_i32_0 : i32, i32, i32, i32, i32
  }
}

</mosaic_0001>

<bundles_post_ra>
// kernel: _unnamed_function_.1
= control target key start
LH: loop header
LB: loop body
LE: loop exit
PB: predicated region body
PF: predicated region fallthrough
CT: control target
= control target key end

     0   :  { %6 = vsyncpa [#allocation3], 0  ;;  %s1227_s0 = inlined_call_operand.hbm [shape: f32[2,4,8,16,16], index: 0, kind: input, shape index: {}]   ;;  %s1228_s1 = inlined_call_operand.hbm [shape: f32[2,7,8,16,16], index: 1, kind: output, shape index: {}]  }
   0x1   :  { %8 = vsyncpa [#allocation3 + $0x1], 0 }
   0x2   :  { %9 = vsyncpa [#allocation4], 0 }
   0x3   :  { %11 = vsyncpa [#allocation4 + $0x1], 0  ;;  %s774_s6 = smov 0   ;;  %s776_s7 = smov 0  }
   0x4   :  { %s778_s8 = smov 0   ;;  %s780_s9 = smov 0  }
   0x5   :  { %s782_s10 = smov 0   ;;  %s784_s11 = smov 0  }
   0x6 LB: > { %s519_s12 = sadd.s32 4294967295, %s756_s11   ;;  %s520_s13 = sadd.s32 4294967294, %s756_s11   ;;  %s756_s11 = sphi %s784_s11, %s17_s11   ;;  %s752_s10 = sphi %s782_s10, %s1239_s10   ;;  %s748_s9 = sphi %s780_s9, %s1238_s9   ;;  %s744_s8 = sphi %s778_s8, %s1237_s8   ;;  %s740_s7 = sphi %s776_s7, %s1236_s7   ;;  %s736_s6 = sphi %s774_s6, %s1235_s6  }
   0x7   : > { %s36_s14 = sadd.s32 1, %s752_s10  ;;  %s47_s15 = sadd.s32 1, %s744_s8 }
   0x8   : > { %p38_p0 = scmp.ge.s32.totalorder %s36_s14, 2  ;;  %p54_p1 = scmp.ne.s32.totalorder %s744_s8, %s740_s7 }
   0x9   : > { %p55_p2 = scmp.eq.s32.totalorder %s756_s11, 0  ;;  %p60_p3 = scmp.ne.s32.totalorder %s740_s7, %s736_s6 }
   0xa   : > { %s1241_s14 = smov (%p38_p0, %s36_s14), 0  ;;  %p61_p5 = scmp.eq.s32.totalorder %s519_s12, 0 }
   0xb   : > { %p815_p4 = por %p55_p2, %p54_p1  ;;  %s40_s17 = ssub.s32 %s752_s10, %s1241_s14 }
   0xc   : > { %p88_p6 = scmp.eq.s32.totalorder %s519_s12, 1  ;;  %p45_p7 = scmp.eq.s32.totalorder %s40_s17, 0 }
   0xd   : > { %p821_p8 = por %p61_p5, %p60_p3  ;;  %p94_p10 = scmp.eq.s32.totalorder %s520_s13, 1 }
   0xe   : > { %p825_p9 = por %p88_p6, %p54_p1  ;;  %p594_p13 = scmp.lt.s32.totalorder %s756_s11, 2 }
   0xf   : > { %s830_s20 = scalar_select %p45_p7, %s744_s8, %s47_s15  }
  0x10   : > { %p832_p11 = por %p94_p10, %p60_p3  ;;  %s114_s22 = sand.u32 1, %s744_s8  }
  0x11   : > { %s523_s23 = sshll.u32 %s114_s22, 9  ;;  %s579_s24 = sshll.u32 %s752_s10, 13 }
  0x12   : > { %s129_s27 = scalar_lea.hbm %s1227_s0, %s579_s24  ;;  %s118_s28 = scalar_lea.vmem [#allocation2], %s523_s23 }
  0x13   : > { %s130_s29 = sshll.u32 %s118_s28, 4  ;;  %p845_p0 = pnand %p594_p13, %p815_p4  ;;  %s131_s29 = int_to_ptr.vmem [resolvable:$true] %s130_s29 }
  0x14   : > { %p526_p1 = scmp.ge.s32.totalorder %s756_s11, 1  ;;  %s115_s2 = scalar_lea.sflag [#allocation3], %s114_s22 }
  0x15   : > { %p650_p2 = pneg %p845_p0  ;;  %s661_s3 = scalar_lea.vmem %s131_s29, 8192 }
  0x16   : > { %p662_p3 = scmp.ne.s32.totalorder %s131_s29, %s661_s3  ;;  %s758_s4 = smov [#allocation2]  }
  0x17   : > { %s666_s5 = sshll.u32 %s758_s4, 4  ;;  %s667_s5 = int_to_ptr.vmem [resolvable:$false] %s666_s5 }
  0x18   : > { %p664_p5 = pnand %p662_p3, %p650_p2  ;;  %s668_s12 = scalar_lea.vmem %s667_s5, 16384 }
  0x19   : > { %p669_p7 = scmp.lt.s32.totalorder %s131_s29, %s667_s5  ;;  %p670_p10 = scmp.lt.s32.totalorder %s668_s12, %s661_s3 }
  0x1a   : > { %p665_p6 = pneg %p664_p5 }
  0x1b   : > { %p671_p12 = por %p670_p10, %p669_p7 }
  0x1d   : > { %p672_p4 = pnand %p671_p12, %p665_p6 }
  0x1f   : > { %675 = shalt.err (!%p672_p4)
}
  0x20   : > { %s759_s13 = smov 128   ;;  %s760_s15 = smov 8  }
  0x21   : > { %589 = dma.hbm_to_vmem [thread:$0]  (!%p845_p0), %s129_s27, 8192, %s131_s29, %s115_s2, %s759_s13, %s759_s13, %s760_s15  }
  0x22   : > { %p138_p13 = scmp.lt.s32.totalorder %s756_s11, 3 }
  0x24   : > { %p139_p2 = pnand %p526_p1, %p138_p13 }
  0x25   : > { %s858_s16 = sand.u32 (!%p139_p2), 1, %s740_s7  }
  0x26   : > { %142 = sbr.rel (%p139_p2) target bundleno = 116 (0x74), region = 24  ;;  %s527_s17 = sshll.u32 (!%p139_p2), %s858_s16, 9 }
  0x27   : > { %s145_s22 = scalar_lea.sflag (!%p139_p2), [#allocation3], %s858_s16  ;;  %s862_s23 = scalar_lea.vmem (!%p139_p2), [#allocation2], %s527_s17 }
  0x2b   : > { %727 = dma.done.wait (%p821_p8), %s145_s22, 8192  }
  0x2c   : > { %729 = vsyncadd (%p821_p8), %s145_s22, 4294959104  ;;  %s580_s24 = smul.u32 896, %s858_s16  ;;  %v189_v0 = vlaneseq  ;;  %vm290_vm0 = vcmask 130048   ;;  %v226_v10 = vld [vmem:[%s862_s23] sm:$0xff]  ;;  %v227_v11 = vld [vmem:[%s862_s23 + $0x8] sm:$0xff]  ;;  %s407_s29 = scalar_lea.sflag [#allocation4], %s858_s16 }
  0x2d   : > { %v228_v12 = vld [vmem:[%s862_s23 + $0x10] sm:$0xff]  ;;  %v229_v17 = vld [vmem:[%s862_s23 + $0x18] sm:$0xff]  ;;  %v230_v18 = vld [vmem:[%s862_s23 + $0x20] sm:$0xff]  ;;  %s581_s18 = smul.u32 14336, %s748_s9  ;;  %s761_s2 = smov [#allocation5]  }
  0x2e   : > { %v190_v1 = vshrl.u32 %v189_v0, 7  ;;  %v198_v2 = vand.u32 127, %v189_v0  ;;  %s871_s25 = scalar_lea.vmem [#allocation5], %s580_s24  ;;  %v231_v19 = vld [vmem:[%s862_s23 + $0x28] sm:$0xff]  ;;  %v232_v24 = vld [vmem:[%s862_s23 + $0x30] sm:$0xff]  ;;  %v233_v25 = vld [vmem:[%s862_s23 + $0x38] sm:$0xff] }
  0x2f   : > { %291 = vst.msk [vmem:[%s871_s25] sm:$0xff] %vm290_vm0, %v226_v10  ;;  %292 = vst.msk [vmem:[%s871_s25 + $0x8] sm:$0xff] %vm290_vm0, %v227_v11  ;;  %v234_v26 = vld [vmem:[%s862_s23 + $0x40] sm:$0xff]  ;;  %v235_v30 = vld [vmem:[%s862_s23 + $0x48] sm:$0xff]  ;;  %s425_s26 = sshll.u32 %s871_s25, 4  ;;  %s1168_s28 = scalar_lea.hbm %s1228_s1, %s581_s18  ;;  %s1170_s26 = int_to_ptr.vmem [resolvable:$true] %s425_s26 }
  0x30   : > { %v195_v3 = vcvt.s32.f32 %v190_v1  ;;  %v869_v4 = vcvt.s32.f32 %v198_v2  ;;  %v191_v5 = vadd.s32 8, %v190_v1  ;;  %293 = vst.msk [vmem:[%s871_s25 + $0x10] sm:$0xff] %vm290_vm0, %v228_v12  ;;  %294 = vst.msk [vmem:[%s871_s25 + $0x18] sm:$0xff] %vm290_vm0, %v229_v17  ;;  %v236_v31 = vld [vmem:[%s862_s23 + $0x50] sm:$0xff]  ;;  %v237_v32 = vld [vmem:[%s862_s23 + $0x58] sm:$0xff]  ;;  %s676_s30 = scalar_lea.vmem %s1170_s26, 14336 }
  0x31   : > { %295 = vst.msk [vmem:[%s871_s25 + $0x20] sm:$0xff] %vm290_vm0, %v230_v18  ;;  %296 = vst.msk [vmem:[%s871_s25 + $0x28] sm:$0xff] %vm290_vm0, %v231_v19  ;;  %v238_v36 = vld [vmem:[%s862_s23 + $0x60] sm:$0xff]  ;;  %v239_v37 = vld [vmem:[%s862_s23 + $0x68] sm:$0xff]  ;;  %p677_p8 = scmp.ne.s32.totalorder %s1170_s26, %s676_s30  ;;  %s680_s3 = sshll.u32 %s761_s2, 4  ;;  %s681_s3 = int_to_ptr.vmem [resolvable:$false] %s680_s3 }
  0x32   : > { %528 = vst.msk [vmem:[%s871_s25 + $0x200] sm:$0xff] %vm290_vm0, %v195_v3  ;;  %544 = vst.msk [vmem:[%s871_s25 + $0x280] sm:$0xff] %vm290_vm0, %v869_v4  ;;  %v196_v6 = vcvt.s32.f32 %v191_v5  ;;  %v202_v7 = vadd.f32 1.0, %v195_v3  ;;  %v204_v8 = vadd.f32 2.0, %v195_v3  ;;  %v206_v9 = vadd.f32 3.0, %v195_v3  ;;  %v240_v38 = vld [vmem:[%s862_s23 + $0x70] sm:$0xff]  ;;  %p683_p1 = scmp.lt.s32.totalorder %s1170_s26, %s681_s3 }
  0x33   : > { %545 = vst.msk [vmem:[%s871_s25 + $0x288] sm:$0xff] %vm290_vm0, %v869_v4  ;;  %v208_v13 = vadd.f32 4.0, %v195_v3  ;;  %v210_v14 = vadd.f32 5.0, %v195_v3  ;;  %v212_v15 = vadd.f32 6.0, %v195_v3  ;;  %v224_v16 = vadd.f32 %v869_v4, %v195_v3  ;;  %297 = vst.msk [vmem:[%s871_s25 + $0x30] sm:$0xff] %vm290_vm0, %v232_v24  ;;  %v241_v42 = vld [vmem:[%s862_s23 + $0x78] sm:$0xff]  ;;  %p678_p12 = pnand %p677_p8, %p825_p9 }
  0x34   : > { %529 = vst.msk [vmem:[%s871_s25 + $0x208] sm:$0xff] %vm290_vm0, %v196_v6  ;;  %530 = vst.msk [vmem:[%s871_s25 + $0x210] sm:$0xff] %vm290_vm0, %v202_v7  ;;  %v203_v20 = vadd.f32 1.0, %v196_v6  ;;  %v205_v21 = vadd.f32 2.0, %v196_v6  ;;  %v207_v22 = vadd.f32 3.0, %v196_v6  ;;  %v225_v23 = vadd.f32 %v869_v4, %v196_v6  ;;  %v242_v43 = vld [vmem:[%s862_s23 + $0x80] sm:$0xff] }
  0x35   : > { %532 = vst.msk [vmem:[%s871_s25 + $0x220] sm:$0xff] %vm290_vm0, %v204_v8  ;;  %534 = vst.msk [vmem:[%s871_s25 + $0x230] sm:$0xff] %vm290_vm0, %v206_v9  ;;  %v209_v27 = vadd.f32 4.0, %v196_v6  ;;  %v211_v28 = vadd.f32 5.0, %v196_v6  ;;  %v213_v29 = vadd.f32 6.0, %v196_v6  ;;  %v214_v33 = vadd.f32 7.0, %v195_v3  ;;  %p679_p0 = pneg %p678_p12 }
  0x36   : > { %536 = vst.msk [vmem:[%s871_s25 + $0x240] sm:$0xff] %vm290_vm0, %v208_v13  ;;  %538 = vst.msk [vmem:[%s871_s25 + $0x250] sm:$0xff] %vm290_vm0, %v210_v14  ;;  %v215_v34 = vadd.f32 7.0, %v196_v6  ;;  %v217_v35 = vadd.f32 1.0, %v869_v4  ;;  %v218_v39 = vadd.f32 2.0, %v869_v4  ;;  %v219_v40 = vadd.f32 3.0, %v869_v4 }
  0x37   : > { %540 = vst.msk [vmem:[%s871_s25 + $0x260] sm:$0xff] %vm290_vm0, %v212_v15  ;;  %560 = vst.msk [vmem:[%s871_s25 + $0x300] sm:$0xff] %vm290_vm0, %v224_v16  ;;  %v220_v41 = vadd.f32 4.0, %v869_v4  ;;  %v243_v44 = vld [vmem:[%s862_s23 + $0x88] sm:$0xff]  ;;  %v221_v45 = vadd.f32 5.0, %v869_v4  ;;  %v222_v46 = vadd.f32 6.0, %v869_v4 }
  0x38   : > { %562 = vst.msk [vmem:[%s871_s25 + $0x310] sm:$0xff] %vm290_vm0, %v224_v16  ;;  %564 = vst.msk [vmem:[%s871_s25 + $0x320] sm:$0xff] %vm290_vm0, %v224_v16  ;;  %v223_v47 = vadd.f32 7.0, %v869_v4  ;;  %v244_v48 = vld [vmem:[%s862_s23 + $0x90] sm:$0xff]  ;;  %v245_v49 = vld [vmem:[%s862_s23 + $0x98] sm:$0xff]  ;;  %s682_s4 = scalar_lea.vmem %s681_s3, 28672 }
  0x39   : > { %566 = vst.msk [vmem:[%s871_s25 + $0x330] sm:$0xff] %vm290_vm0, %v224_v16  ;;  %568 = vst.msk [vmem:[%s871_s25 + $0x340] sm:$0xff] %vm290_vm0, %v224_v16  ;;  %v246_v50 = vld [vmem:[%s862_s23 + $0xa0] sm:$0xff]  ;;  %v247_v51 = vld [vmem:[%s862_s23 + $0xa8] sm:$0xff]  ;;  %p684_p3 = scmp.lt.s32.totalorder %s682_s4, %s676_s30 }
  0x3a   : > { %570 = vst.msk [vmem:[%s871_s25 + $0x350] sm:$0xff] %vm290_vm0, %v224_v16  ;;  %572 = vst.msk [vmem:[%s871_s25 + $0x360] sm:$0xff] %vm290_vm0, %v224_v16  ;;  %v248_v52 = vld [vmem:[%s862_s23 + $0xb0] sm:$0xff]  ;;  %v249_v53 = vld [vmem:[%s862_s23 + $0xb8] sm:$0xff] }
  0x3b   : > { %574 = vst.msk [vmem:[%s871_s25 + $0x370] sm:$0xff] %vm290_vm0, %v224_v16  ;;  %298 = vst.msk [vmem:[%s871_s25 + $0x38] sm:$0xff] %vm290_vm0, %v233_v25  ;;  %v250_v54 = vld [vmem:[%s862_s23 + $0xc0] sm:$0xff]  ;;  %v251_v55 = vld [vmem:[%s862_s23 + $0xc8] sm:$0xff]  ;;  %p685_p5 = por %p684_p3, %p683_p1 }
  0x3c   : > { %299 = vst.msk [vmem:[%s871_s25 + $0x40] sm:$0xff] %vm290_vm0, %v234_v26  ;;  %531 = vst.msk [vmem:[%s871_s25 + $0x218] sm:$0xff] %vm290_vm0, %v203_v20  ;;  %v252_v56 = vld [vmem:[%s862_s23 + $0xd0] sm:$0xff]  ;;  %v253_v57 = vld [vmem:[%s862_s23 + $0xd8] sm:$0xff] }
  0x3d   : > { %533 = vst.msk [vmem:[%s871_s25 + $0x228] sm:$0xff] %vm290_vm0, %v205_v21  ;;  %535 = vst.msk [vmem:[%s871_s25 + $0x238] sm:$0xff] %vm290_vm0, %v207_v22  ;;  %v254_v58 = vld [vmem:[%s862_s23 + $0xe0] sm:$0xff]  ;;  %v255_v59 = vld [vmem:[%s862_s23 + $0xe8] sm:$0xff]  ;;  %p686_p6 = pnand %p685_p5, %p679_p0 }
  0x3e   : > { %561 = vst.msk [vmem:[%s871_s25 + $0x308] sm:$0xff] %vm290_vm0, %v225_v23  ;;  %563 = vst.msk [vmem:[%s871_s25 + $0x318] sm:$0xff] %vm290_vm0, %v225_v23  ;;  %v256_v60 = vld [vmem:[%s862_s23 + $0xf0] sm:$0xff]  ;;  %v257_v61 = vld [vmem:[%s862_s23 + $0xf8] sm:$0xff] }
  0x3f   : > { %565 = vst.msk [vmem:[%s871_s25 + $0x328] sm:$0xff] %vm290_vm0, %v225_v23  ;;  %567 = vst.msk [vmem:[%s871_s25 + $0x338] sm:$0xff] %vm290_vm0, %v225_v23  ;;  %v258_v62 = vld [vmem:[%s862_s23 + $0x100] sm:$0xff]  ;;  %v259_v63 = vld [vmem:[%s862_s23 + $0x108] sm:$0xff] }
  0x40   : > { %569 = vst.msk [vmem:[%s871_s25 + $0x348] sm:$0xff] %vm290_vm0, %v225_v23  ;;  %571 = vst.msk [vmem:[%s871_s25 + $0x358] sm:$0xff] %vm290_vm0, %v225_v23  ;;  %v260_v0 = vld [vmem:[%s862_s23 + $0x110] sm:$0xff]  ;;  %v261_v1 = vld [vmem:[%s862_s23 + $0x118] sm:$0xff] }
  0x41   : > { %573 = vst.msk [vmem:[%s871_s25 + $0x368] sm:$0xff] %vm290_vm0, %v225_v23  ;;  %575 = vst.msk [vmem:[%s871_s25 + $0x378] sm:$0xff] %vm290_vm0, %v225_v23  ;;  %v262_v2 = vld [vmem:[%s862_s23 + $0x120] sm:$0xff]  ;;  %v263_v3 = vld [vmem:[%s862_s23 + $0x128] sm:$0xff] }
  0x42   : > { %300 = vst.msk [vmem:[%s871_s25 + $0x48] sm:$0xff] %vm290_vm0, %v235_v30  ;;  %301 = vst.msk [vmem:[%s871_s25 + $0x50] sm:$0xff] %vm290_vm0, %v236_v31  ;;  %v264_v4 = vld [vmem:[%s862_s23 + $0x130] sm:$0xff]  ;;  %v265_v5 = vld [vmem:[%s862_s23 + $0x138] sm:$0xff] }
  0x43   : > { %302 = vst.msk [vmem:[%s871_s25 + $0x58] sm:$0xff] %vm290_vm0, %v237_v32  ;;  %537 = vst.msk [vmem:[%s871_s25 + $0x248] sm:$0xff] %vm290_vm0, %v209_v27  ;;  %v266_v6 = vld [vmem:[%s862_s23 + $0x140] sm:$0xff]  ;;  %v267_v7 = vld [vmem:[%s862_s23 + $0x148] sm:$0xff] }
  0x44   : > { %539 = vst.msk [vmem:[%s871_s25 + $0x258] sm:$0xff] %vm290_vm0, %v211_v28  ;;  %541 = vst.msk [vmem:[%s871_s25 + $0x268] sm:$0xff] %vm290_vm0, %v213_v29  ;;  %v268_v8 = vld [vmem:[%s862_s23 + $0x150] sm:$0xff]  ;;  %v269_v9 = vld [vmem:[%s862_s23 + $0x158] sm:$0xff] }
  0x45   : > { %303 = vst.msk [vmem:[%s871_s25 + $0x60] sm:$0xff] %vm290_vm0, %v238_v36  ;;  %304 = vst.msk [vmem:[%s871_s25 + $0x68] sm:$0xff] %vm290_vm0, %v239_v37  ;;  %v270_v10 = vld [vmem:[%s862_s23 + $0x160] sm:$0xff]  ;;  %v271_v11 = vld [vmem:[%s862_s23 + $0x168] sm:$0xff] }
  0x46   : > { %305 = vst.msk [vmem:[%s871_s25 + $0x70] sm:$0xff] %vm290_vm0, %v240_v38  ;;  %542 = vst.msk [vmem:[%s871_s25 + $0x270] sm:$0xff] %vm290_vm0, %v214_v33  ;;  %v272_v12 = vld [vmem:[%s862_s23 + $0x170] sm:$0xff]  ;;  %v273_v13 = vld [vmem:[%s862_s23 + $0x178] sm:$0xff] }
  0x47   : > { %543 = vst.msk [vmem:[%s871_s25 + $0x278] sm:$0xff] %vm290_vm0, %v215_v34  ;;  %546 = vst.msk [vmem:[%s871_s25 + $0x290] sm:$0xff] %vm290_vm0, %v217_v35  ;;  %v274_v14 = vld [vmem:[%s862_s23 + $0x180] sm:$0xff]  ;;  %v275_v15 = vld [vmem:[%s862_s23 + $0x188] sm:$0xff] }
  0x48   : > { %547 = vst.msk [vmem:[%s871_s25 + $0x298] sm:$0xff] %vm290_vm0, %v217_v35  ;;  %306 = vst.msk [vmem:[%s871_s25 + $0x78] sm:$0xff] %vm290_vm0, %v241_v42  ;;  %v276_v16 = vld [vmem:[%s862_s23 + $0x190] sm:$0xff]  ;;  %v277_v17 = vld [vmem:[%s862_s23 + $0x198] sm:$0xff] }
  0x49   : > { %307 = vst.msk [vmem:[%s871_s25 + $0x80] sm:$0xff] %vm290_vm0, %v242_v43  ;;  %308 = vst.msk [vmem:[%s871_s25 + $0x88] sm:$0xff] %vm290_vm0, %v243_v44  ;;  %v278_v18 = vld [vmem:[%s862_s23 + $0x1a0] sm:$0xff]  ;;  %v279_v19 = vld [vmem:[%s862_s23 + $0x1a8] sm:$0xff] }
  0x4a   : > { %548 = vst.msk [vmem:[%s871_s25 + $0x2a0] sm:$0xff] %vm290_vm0, %v218_v39  ;;  %549 = vst.msk [vmem:[%s871_s25 + $0x2a8] sm:$0xff] %vm290_vm0, %v218_v39  ;;  %v280_v20 = vld [vmem:[%s862_s23 + $0x1b0] sm:$0xff]  ;;  %v281_v21 = vld [vmem:[%s862_s23 + $0x1b8] sm:$0xff] }
  0x4b   : > { %550 = vst.msk [vmem:[%s871_s25 + $0x2b0] sm:$0xff] %vm290_vm0, %v219_v40  ;;  %551 = vst.msk [vmem:[%s871_s25 + $0x2b8] sm:$0xff] %vm290_vm0, %v219_v40  ;;  %v282_v22 = vld [vmem:[%s862_s23 + $0x1c0] sm:$0xff]  ;;  %v283_v23 = vld [vmem:[%s862_s23 + $0x1c8] sm:$0xff] }
  0x4c   : > { %552 = vst.msk [vmem:[%s871_s25 + $0x2c0] sm:$0xff] %vm290_vm0, %v220_v41  ;;  %553 = vst.msk [vmem:[%s871_s25 + $0x2c8] sm:$0xff] %vm290_vm0, %v220_v41  ;;  %v284_v24 = vld [vmem:[%s862_s23 + $0x1d0] sm:$0xff]  ;;  %v285_v25 = vld [vmem:[%s862_s23 + $0x1d8] sm:$0xff] }
  0x4d   : > { %309 = vst.msk [vmem:[%s871_s25 + $0x90] sm:$0xff] %vm290_vm0, %v244_v48  ;;  %310 = vst.msk [vmem:[%s871_s25 + $0x98] sm:$0xff] %vm290_vm0, %v245_v49  ;;  %v286_v26 = vld [vmem:[%s862_s23 + $0x1e0] sm:$0xff]  ;;  %v287_v27 = vld [vmem:[%s862_s23 + $0x1e8] sm:$0xff] }
  0x4e   : > { %311 = vst.msk [vmem:[%s871_s25 + $0xa0] sm:$0xff] %vm290_vm0, %v246_v50  ;;  %554 = vst.msk [vmem:[%s871_s25 + $0x2d0] sm:$0xff] %vm290_vm0, %v221_v45  ;;  %v288_v28 = vld [vmem:[%s862_s23 + $0x1f0] sm:$0xff]  ;;  %v289_v29 = vld [vmem:[%s862_s23 + $0x1f8] sm:$0xff] }
  0x4f   : > { %555 = vst.msk [vmem:[%s871_s25 + $0x2d8] sm:$0xff] %vm290_vm0, %v221_v45  ;;  %556 = vst.msk [vmem:[%s871_s25 + $0x2e0] sm:$0xff] %vm290_vm0, %v222_v46 }
  0x50   : > { %557 = vst.msk [vmem:[%s871_s25 + $0x2e8] sm:$0xff] %vm290_vm0, %v222_v46  ;;  %558 = vst.msk [vmem:[%s871_s25 + $0x2f0] sm:$0xff] %vm290_vm0, %v223_v47 }
  0x51   : > { %559 = vst.msk [vmem:[%s871_s25 + $0x2f8] sm:$0xff] %vm290_vm0, %v223_v47  ;;  %312 = vst.msk [vmem:[%s871_s25 + $0xa8] sm:$0xff] %vm290_vm0, %v247_v51 }
  0x52   : > { %313 = vst.msk [vmem:[%s871_s25 + $0xb0] sm:$0xff] %vm290_vm0, %v248_v52  ;;  %314 = vst.msk [vmem:[%s871_s25 + $0xb8] sm:$0xff] %vm290_vm0, %v249_v53 }
  0x53   : > { %315 = vst.msk [vmem:[%s871_s25 + $0xc0] sm:$0xff] %vm290_vm0, %v250_v54  ;;  %316 = vst.msk [vmem:[%s871_s25 + $0xc8] sm:$0xff] %vm290_vm0, %v251_v55 }
  0x54   : > { %317 = vst.msk [vmem:[%s871_s25 + $0xd0] sm:$0xff] %vm290_vm0, %v252_v56  ;;  %318 = vst.msk [vmem:[%s871_s25 + $0xd8] sm:$0xff] %vm290_vm0, %v253_v57 }
  0x55   : > { %319 = vst.msk [vmem:[%s871_s25 + $0xe0] sm:$0xff] %vm290_vm0, %v254_v58  ;;  %320 = vst.msk [vmem:[%s871_s25 + $0xe8] sm:$0xff] %vm290_vm0, %v255_v59 }
  0x56   : > { %321 = vst.msk [vmem:[%s871_s25 + $0xf0] sm:$0xff] %vm290_vm0, %v256_v60  ;;  %322 = vst.msk [vmem:[%s871_s25 + $0xf8] sm:$0xff] %vm290_vm0, %v257_v61 }
  0x57   : > { %323 = vst.msk [vmem:[%s871_s25 + $0x100] sm:$0xff] %vm290_vm0, %v258_v62  ;;  %324 = vst.msk [vmem:[%s871_s25 + $0x108] sm:$0xff] %vm290_vm0, %v259_v63 }
  0x58   : > { %325 = vst.msk [vmem:[%s871_s25 + $0x110] sm:$0xff] %vm290_vm0, %v260_v0  ;;  %326 = vst.msk [vmem:[%s871_s25 + $0x118] sm:$0xff] %vm290_vm0, %v261_v1 }
  0x59   : > { %327 = vst.msk [vmem:[%s871_s25 + $0x120] sm:$0xff] %vm290_vm0, %v262_v2  ;;  %328 = vst.msk [vmem:[%s871_s25 + $0x128] sm:$0xff] %vm290_vm0, %v263_v3 }
  0x5a   : > { %329 = vst.msk [vmem:[%s871_s25 + $0x130] sm:$0xff] %vm290_vm0, %v264_v4  ;;  %330 = vst.msk [vmem:[%s871_s25 + $0x138] sm:$0xff] %vm290_vm0, %v265_v5 }
  0x5b   : > { %331 = vst.msk [vmem:[%s871_s25 + $0x140] sm:$0xff] %vm290_vm0, %v266_v6  ;;  %332 = vst.msk [vmem:[%s871_s25 + $0x148] sm:$0xff] %vm290_vm0, %v267_v7 }
  0x5c   : > { %333 = vst.msk [vmem:[%s871_s25 + $0x150] sm:$0xff] %vm290_vm0, %v268_v8  ;;  %334 = vst.msk [vmem:[%s871_s25 + $0x158] sm:$0xff] %vm290_vm0, %v269_v9 }
  0x5d   : > { %335 = vst.msk [vmem:[%s871_s25 + $0x160] sm:$0xff] %vm290_vm0, %v270_v10  ;;  %336 = vst.msk [vmem:[%s871_s25 + $0x168] sm:$0xff] %vm290_vm0, %v271_v11 }
  0x5e   : > { %337 = vst.msk [vmem:[%s871_s25 + $0x170] sm:$0xff] %vm290_vm0, %v272_v12  ;;  %338 = vst.msk [vmem:[%s871_s25 + $0x178] sm:$0xff] %vm290_vm0, %v273_v13 }
  0x5f   : > { %339 = vst.msk [vmem:[%s871_s25 + $0x180] sm:$0xff] %vm290_vm0, %v274_v14  ;;  %340 = vst.msk [vmem:[%s871_s25 + $0x188] sm:$0xff] %vm290_vm0, %v275_v15 }
  0x60   : > { %341 = vst.msk [vmem:[%s871_s25 + $0x190] sm:$0xff] %vm290_vm0, %v276_v16  ;;  %342 = vst.msk [vmem:[%s871_s25 + $0x198] sm:$0xff] %vm290_vm0, %v277_v17 }
  0x61   : > { %343 = vst.msk [vmem:[%s871_s25 + $0x1a0] sm:$0xff] %vm290_vm0, %v278_v18  ;;  %344 = vst.msk [vmem:[%s871_s25 + $0x1a8] sm:$0xff] %vm290_vm0, %v279_v19 }
  0x62   : > { %345 = vst.msk [vmem:[%s871_s25 + $0x1b0] sm:$0xff] %vm290_vm0, %v280_v20  ;;  %346 = vst.msk [vmem:[%s871_s25 + $0x1b8] sm:$0xff] %vm290_vm0, %v281_v21 }
  0x63   : > { %347 = vst.msk [vmem:[%s871_s25 + $0x1c0] sm:$0xff] %vm290_vm0, %v282_v22  ;;  %348 = vst.msk [vmem:[%s871_s25 + $0x1c8] sm:$0xff] %vm290_vm0, %v283_v23 }
  0x64   : > { %349 = vst.msk [vmem:[%s871_s25 + $0x1d0] sm:$0xff] %vm290_vm0, %v284_v24  ;;  %350 = vst.msk [vmem:[%s871_s25 + $0x1d8] sm:$0xff] %vm290_vm0, %v285_v25 }
  0x65   : > { %351 = vst.msk [vmem:[%s871_s25 + $0x1e0] sm:$0xff] %vm290_vm0, %v286_v26  ;;  %352 = vst.msk [vmem:[%s871_s25 + $0x1e8] sm:$0xff] %vm290_vm0, %v287_v27 }
  0x66   : > { %353 = vst.msk [vmem:[%s871_s25 + $0x1f0] sm:$0xff] %vm290_vm0, %v288_v28  ;;  %354 = vst.msk [vmem:[%s871_s25 + $0x1f8] sm:$0xff] %vm290_vm0, %v289_v29 }
  0x67   : > { %689 = shalt.err (!%p686_p6)
}
  0x68   : > { %s690_s5 = scalar_lea.hbm %s1168_s28, 14336  ;;  %s694_s15 = scalar_lea.hbm %s1228_s1, 28672 }
  0x69   : > { %p691_p7 = scmp.ne.s32.totalorder %s1168_s28, %s690_s5  ;;  %p695_p13 = scmp.lt.s32.totalorder %s1168_s28, %s1228_s1 }
  0x6a   : > { %p696_p2 = scmp.lt.s32.totalorder %s694_s15, %s690_s5 }
  0x6b   : > { %p692_p10 = pnand %p691_p7, %p825_p9 }
  0x6c   : > { %p697_p8 = por %p696_p2, %p695_p13 }
  0x6d   : > { %p693_p4 = pneg %p692_p10 }
  0x6f   : > { %p698_p12 = pnand %p697_p8, %p693_p4 }
  0x71   : > { %701 = shalt.err (!%p698_p12)
}
  0x72   : > { %s762_s23 = smov 128   ;;  %s763_s24 = smov 8  }
  0x73   : > { %584 = dma.vmem_to_hbm [thread:$0]  (%p825_p9), %s1170_s26, 14336, %s1168_s28, %s407_s29, %s762_s23, %s762_s23, %s763_s24  }
  0x74 PF: > { %s440_s25 = sand.u32 1, %s736_s6   ;;  %p1234_p0 = scmp.ge.s32.totalorder %s756_s11, 2 }
  0x75   : > { %s441_s18 = scalar_lea.sflag [#allocation4], %s440_s25 }
  0x76   : > { %p591_p1 = pnand %p1234_p0, %p832_p11 }
  0x78   : > { %p592_p3 = pneg %p591_p1 }
  0x7a   : > { %731 = dma.done.wait (%p592_p3), %s441_s18, 14336  }
  0x7b   : > { %733 = vsyncadd (%p592_p3), %s441_s18, 4294952960  ;;  %s17_s11 = sadd.s32 1, %s756_s11   ;;  %s1235_s6 = smov %s740_s7 }
  0x7c   : > { %p14_p5 = scmp.ge.s32.totalorder %s17_s11, 4   ;;  %s1236_s7 = smov %s744_s8 }
  0x7d   : > { %s1237_s8 = smov %s830_s20  ;;  %s1238_s9 = smov %s752_s10 }
  0x7e   : > { %s1239_s10 = smov %s1241_s14  ;;  %16 = sbr.rel (!%p14_p5) target bundleno = 6 (0x6), region = 72 }
  0x83   :  { %446 = vsyncpa [#allocation3], 1 }
  0x84   :  { %448 = vsyncpa [#allocation3 + $0x1], 1 }
  0x85   :  { %449 = vsyncpa [#allocation4], 1 }
  0x86   :  { %451 = vsyncpa [#allocation4 + $0x1], 1 }

</bundles_post_ra>
